<compile_context>
chip_gen: v7x
topology: tpu7x:2x2x1
jax: 0.10.0
libtpu: 0.0.40
codegen_flags: <defaults>
</compile_context>

<pallas_src>
import jax
import jax.numpy as jnp
from jax.experimental import pallas as pl
from jax.experimental.pallas import tpu as pltpu

N_LAYERS = 10     # 9 hidden + 1 output
HID = 50
N_OUT = 8
FPAD = 128        # padded feature (lane) width for hidden activations


def _round_up(x, m):
    return ((x + m - 1) // m) * m


def _bf16_eltwise_ok():
    """bf16 VPU/EUP elementwise path: v6e / v7x yes; v5e (and unknown) no."""
    try:
        kind = jax.devices()[0].device_kind.lower()
    except Exception:
        return False
    return ("v6" in kind) or ("v7" in kind)


_BF16_ELTWISE = _bf16_eltwise_ok()


def _make_mlp_kernel(bf16_act):
    def kernel(x_ref, w0_ref, wh_ref, b_ref, o_ref):
        """One batch tile.

        x_ref : (TB, F)        bf16  -- raw input features (no lane padding)
        w0_ref: (F, 128)       bf16  -- layer-0 weight, zero-padded cols (resident)
        wh_ref: (9, 128, 128)  bf16  -- layers 1..9 weights, zero-padded (resident)
        b_ref : (10, 1, 128)   f32   -- all biases, zero-padded (resident)
        o_ref : (TB, 8)        f32   -- log-softmax output (lane-narrow)
        """
        # Layer 0: (TB, F) @ (F, 128) -> f32 accumulation on the MXU.
        h = jnp.dot(x_ref[...], w0_ref[...],
                    preferred_element_type=jnp.float32) + b_ref[0]

        for i in range(1, N_LAYERS):            # static, fully unrolled
            if bf16_act:
                # bf16 sigmoid (EUP/VPU) -> reused directly as bf16 MXU LHS.
                a = jax.nn.sigmoid(h.astype(jnp.bfloat16))
            else:
                # v5e: keep elementwise math f32, pack to bf16 only for the MXU.
                a = jax.nn.sigmoid(h).astype(jnp.bfloat16)
            h = jnp.dot(a, wh_ref[i - 1],
                        preferred_element_type=jnp.float32) + b_ref[i]

        # LogSoftmax over the 8 real logits.  Pad lanes (>= 8) are exactly 0
        # (zero weight cols / zero bias pad); mask them so they don't touch
        # the max / sum normalizer, then store only the 8 real lanes.
        lane = jax.lax.broadcasted_iota(jnp.int32, h.shape, 1)
        hm = jnp.where(lane < N_OUT, h, -1e30)
        m = jnp.max(hm, axis=-1, keepdims=True)
        z = hm - m
        lse = jnp.log(jnp.sum(jnp.exp(z), axis=-1, keepdims=True))
        o_ref[...] = (z[:, :N_OUT] - lse).astype(o_ref.dtype)

    return kernel


def _choose_tb(B):
    """Batch tile: multiple of 16 (bf16 sublane packing); >= 2 grid steps once
    B > 32 (both v7x TensorCores engage); <= 1024 rows per tile."""
    if B <= 32:
        return _round_up(B, 16)
    n_tiles = max(2, -(-B // 1024))          # ceil(B / 1024), at least 2
    return _round_up(-(-B // n_tiles), 16)   # ceil(B / n_tiles), 16-aligned


@jax.jit
def network_forward(x, w0, wh, b_slab):
    """x: (B, n*n); w0: (F,128) bf16; wh: (9,128,128) bf16; b_slab: (10,1,128) f32."""
    B, F = x.shape
    TB = _choose_tb(B)
    B_pad = _round_up(B, TB)
    # bf16 input + (possible) row padding in one fused pass; no lane padding.
    xb = jnp.pad(x.astype(jnp.bfloat16), ((0, B_pad - B), (0, 0)))

    out = pl.pallas_call(
        _make_mlp_kernel(_BF16_ELTWISE),
        out_shape=jax.ShapeDtypeStruct((B_pad, N_OUT), jnp.float32),
        grid=(B_pad // TB,),
        in_specs=[
            pl.BlockSpec((TB, F), lambda i: (i, 0)),                        # x tile
            pl.BlockSpec((F, FPAD), lambda i: (0, 0)),                      # w0 (resident)
            pl.BlockSpec((N_LAYERS - 1, FPAD, FPAD), lambda i: (0, 0, 0)),  # w1..w9 (resident)
            pl.BlockSpec((N_LAYERS, 1, FPAD), lambda i: (0, 0, 0)),         # biases (resident)
        ],
        out_specs=pl.BlockSpec((TB, N_OUT), lambda i: (i, 0)),
        compiler_params=pltpu.CompilerParams(
            dimension_semantics=("parallel",)),
    )(xb, w0, wh, b_slab)

    return out[:B]


def init_params(key, n):
    """PyTorch-Linear-like init (U[-1/sqrt(fan_in), 1/sqrt(fan_in)]).

    Weights stored as (in_features, out_features); biases as (1, out_features).
    """
    dims = [n * n] + [HID] * 9 + [N_OUT]
    params = []
    for i in range(N_LAYERS):
        fan_in, fan_out = dims[i], dims[i + 1]
        key, kw, kb = jax.random.split(key, 3)
        bound = 1.0 / (fan_in ** 0.5)
        w = jax.random.uniform(kw, (fan_in, fan_out), jnp.float32, -bound, bound)
        b = jax.random.uniform(kb, (1, fan_out), jnp.float32, -bound, bound)
        params.extend([w, b])
    return tuple(params)


def pack_params(params, n):
    """Pack the 20 tensors into three zero-padded, lane-aligned slabs (once)."""
    F = n * n
    w0 = jnp.zeros((F, FPAD), jnp.float32).at[:, :HID].set(params[0])
    wh = jnp.zeros((N_LAYERS - 1, FPAD, FPAD), jnp.float32)
    b = jnp.zeros((N_LAYERS, 1, FPAD), jnp.float32)
    b = b.at[0, :, :HID].set(params[1])
    for i in range(1, N_LAYERS):
        w, bi = params[2 * i], params[2 * i + 1]
        fin, fout = w.shape
        wh = wh.at[i - 1, :fin, :fout].set(w)
        b = b.at[i, :, :fout].set(bi)
    return w0.astype(jnp.bfloat16), wh.astype(jnp.bfloat16), b


def reference_forward_f32(x, params):
    """Pure f32 plain-JAX reference (original module semantics)."""
    h = x
    for i in range(N_LAYERS):
        w, b = params[2 * i], params[2 * i + 1]
        h = h @ w + b
        if i < N_LAYERS - 1:
            h = jax.nn.sigmoid(h)
    return jax.nn.log_softmax(h, axis=-1)


def reference_forward_matched(x, w0, wh, b_slab, bf16_act):
    """Plain-JAX reference mirroring the kernel math exactly."""
    h = jnp.dot(x.astype(jnp.bfloat16), w0,
                preferred_element_type=jnp.float32) + b_slab[0]
    for i in range(1, N_LAYERS):
        if bf16_act:
            a = jax.nn.sigmoid(h.astype(jnp.bfloat16))
        else:
            a = jax.nn.sigmoid(h).astype(jnp.bfloat16)
        h = jnp.dot(a, wh[i - 1], preferred_element_type=jnp.float32) + b_slab[i]
    return jax.nn.log_softmax(h[:, :N_OUT], axis=-1)


if __name__ == "__main__":
    n = 4               # board size -> n*n = 16 input features
    key = jax.random.PRNGKey(0)
    key, kx1, kx2 = jax.random.split(key, 3)
    params = init_params(key, n)
    w0, wh, b_slab = pack_params(params, n)

    # Small batch (single grid step).
    x1 = jax.random.normal(kx1, (2, n * n), dtype=jnp.float32)
    out1 = jax.block_until_ready(network_forward(x1, w0, wh, b_slab))
    assert out1.shape == (2, N_OUT), out1.shape
    ref1_m = reference_forward_matched(x1, w0, wh, b_slab, _BF16_ELTWISE)
    ref1_f = reference_forward_f32(x1, params)
    err1_m = float(jnp.max(jnp.abs(out1 - ref1_m)))
    err1_f = float(jnp.max(jnp.abs(out1 - ref1_f)))
    assert err1_m < 2e-2, f"kernel vs matched-math reference max err {err1_m}"
    assert err1_f < 5e-2, f"kernel vs f32 reference max err {err1_f}"

    # Larger batch exercising a 2-step "parallel" grid plus batch-row padding.
    x2 = jax.random.normal(kx2, (40, n * n), dtype=jnp.float32)
    out2 = jax.block_until_ready(network_forward(x2, w0, wh, b_slab))
    assert out2.shape == (40, N_OUT), out2.shape
    ref2_m = reference_forward_matched(x2, w0, wh, b_slab, _BF16_ELTWISE)
    err2_m = float(jnp.max(jnp.abs(out2 - ref2_m)))
    assert err2_m < 2e-2, f"multi-tile kernel vs matched reference max err {err2_m}"

    print("KERNEL_OK")
</pallas_src>

<mosaic_0001>
module attributes {stable_mosaic.version = 11 : i64} {
  func.func @kernel(%arg0: i32, %arg1: memref<16x16xbf16, #tpu.memory_space<vmem>>, %arg2: memref<16x128xbf16, #tpu.memory_space<vmem>>, %arg3: memref<9x128x128xbf16, #tpu.memory_space<vmem>>, %arg4: memref<10x1x128xf32, #tpu.memory_space<vmem>>, %arg5: memref<16x8xf32, #tpu.memory_space<vmem>>) attributes {dimension_semantics = [#tpu.dimension_semantics<parallel>], iteration_bounds = array<i64: 1>, scalar_prefetch = 0 : i64, scratch_operands = 0 : i64, tpu.core_type = #tpu.core_type<tc>, window_params = [{transform_indices = @transform_0, window_bounds = array<i64: 16, 16>}, {pipeline_mode = #tpu.pipeline_mode<synchronous>, transform_indices = @transform_1, window_bounds = array<i64: 16, 128>}, {pipeline_mode = #tpu.pipeline_mode<synchronous>, transform_indices = @transform_2, window_bounds = array<i64: 9, 128, 128>}, {pipeline_mode = #tpu.pipeline_mode<synchronous>, transform_indices = @transform_3, window_bounds = array<i64: 10, 1, 128>}, {transform_indices = @transform_4, window_bounds = array<i64: 16, 8>}]} {
    %c0 = arith.constant 0 : index
    %c0_0 = arith.constant 0 : index
    %0 = vector.load %arg1[%c0, %c0_0] : memref<16x16xbf16, #tpu.memory_space<vmem>>, vector<16x16xbf16>
    %c0_1 = arith.constant 0 : index
    %c0_2 = arith.constant 0 : index
    %1 = vector.load %arg2[%c0_1, %c0_2] : memref<16x128xbf16, #tpu.memory_space<vmem>>, vector<16x128xbf16>
    %cst = arith.constant dense<0.000000e+00> : vector<16x128xf32>
    %2 = tpu.matmul %0, %1, %cst {dimension_numbers = #tpu.dot_dimension_numbers<[1], [0], [0], [1], [0, 0, 1, 1], [], []>} : vector<16x16xbf16>, vector<16x128xbf16>, vector<16x128xf32> -> vector<16x128xf32>
    %c0_3 = arith.constant 0 : index
    %c0_4 = arith.constant 0 : index
    %c0_5 = arith.constant 0 : index
    %3 = vector.load %arg4[%c0_3, %c0_4, %c0_5] : memref<10x1x128xf32, #tpu.memory_space<vmem>>, vector<1x1x128xf32>
    %4 = vector.shape_cast %3 : vector<1x1x128xf32> to vector<1x128xf32>
    %5 = vector.broadcast %4 : vector<1x128xf32> to vector<16x128xf32>
    %6 = arith.addf %2, %5 : vector<16x128xf32>
    %7 = arith.negf %6 : vector<16x128xf32>
    %8 = math.exp %7 : vector<16x128xf32>
    %cst_6 = arith.constant 1.000000e+00 : f32
    %9 = vector.broadcast %cst_6 : f32 to vector<16x128xf32>
    %10 = arith.addf %9, %8 : vector<16x128xf32>
    %11 = arith.divf %9, %10 : vector<16x128xf32>
    %12 = arith.truncf %11 : vector<16x128xf32> to vector<16x128xbf16>
    %c0_7 = arith.constant 0 : index
    %c0_8 = arith.constant 0 : index
    %c0_9 = arith.constant 0 : index
    %13 = vector.load %arg3[%c0_7, %c0_8, %c0_9] : memref<9x128x128xbf16, #tpu.memory_space<vmem>>, vector<1x128x128xbf16>
    %14 = vector.shape_cast %13 : vector<1x128x128xbf16> to vector<128x128xbf16>
    %cst_10 = arith.constant dense<0.000000e+00> : vector<16x128xf32>
    %15 = tpu.matmul %12, %14, %cst_10 {dimension_numbers = #tpu.dot_dimension_numbers<[1], [0], [0], [1], [0, 0, 1, 1], [], []>} : vector<16x128xbf16>, vector<128x128xbf16>, vector<16x128xf32> -> vector<16x128xf32>
    %c1 = arith.constant 1 : index
    %c0_11 = arith.constant 0 : index
    %c0_12 = arith.constant 0 : index
    %16 = vector.load %arg4[%c1, %c0_11, %c0_12] : memref<10x1x128xf32, #tpu.memory_space<vmem>>, vector<1x1x128xf32>
    %17 = vector.shape_cast %16 : vector<1x1x128xf32> to vector<1x128xf32>
    %18 = vector.broadcast %17 : vector<1x128xf32> to vector<16x128xf32>
    %19 = arith.addf %15, %18 : vector<16x128xf32>
    %20 = arith.negf %19 : vector<16x128xf32>
    %21 = math.exp %20 : vector<16x128xf32>
    %cst_13 = arith.constant 1.000000e+00 : f32
    %22 = vector.broadcast %cst_13 : f32 to vector<16x128xf32>
    %23 = arith.addf %22, %21 : vector<16x128xf32>
    %24 = arith.divf %22, %23 : vector<16x128xf32>
    %25 = arith.truncf %24 : vector<16x128xf32> to vector<16x128xbf16>
    %c1_14 = arith.constant 1 : index
    %c0_15 = arith.constant 0 : index
    %c0_16 = arith.constant 0 : index
    %26 = vector.load %arg3[%c1_14, %c0_15, %c0_16] : memref<9x128x128xbf16, #tpu.memory_space<vmem>>, vector<1x128x128xbf16>
    %27 = vector.shape_cast %26 : vector<1x128x128xbf16> to vector<128x128xbf16>
    %cst_17 = arith.constant dense<0.000000e+00> : vector<16x128xf32>
    %28 = tpu.matmul %25, %27, %cst_17 {dimension_numbers = #tpu.dot_dimension_numbers<[1], [0], [0], [1], [0, 0, 1, 1], [], []>} : vector<16x128xbf16>, vector<128x128xbf16>, vector<16x128xf32> -> vector<16x128xf32>
    %c2 = arith.constant 2 : index
    %c0_18 = arith.constant 0 : index
    %c0_19 = arith.constant 0 : index
    %29 = vector.load %arg4[%c2, %c0_18, %c0_19] : memref<10x1x128xf32, #tpu.memory_space<vmem>>, vector<1x1x128xf32>
    %30 = vector.shape_cast %29 : vector<1x1x128xf32> to vector<1x128xf32>
    %31 = vector.broadcast %30 : vector<1x128xf32> to vector<16x128xf32>
    %32 = arith.addf %28, %31 : vector<16x128xf32>
    %33 = arith.negf %32 : vector<16x128xf32>
    %34 = math.exp %33 : vector<16x128xf32>
    %cst_20 = arith.constant 1.000000e+00 : f32
    %35 = vector.broadcast %cst_20 : f32 to vector<16x128xf32>
    %36 = arith.addf %35, %34 : vector<16x128xf32>
    %37 = arith.divf %35, %36 : vector<16x128xf32>
    %38 = arith.truncf %37 : vector<16x128xf32> to vector<16x128xbf16>
    %c2_21 = arith.constant 2 : index
    %c0_22 = arith.constant 0 : index
    %c0_23 = arith.constant 0 : index
    %39 = vector.load %arg3[%c2_21, %c0_22, %c0_23] : memref<9x128x128xbf16, #tpu.memory_space<vmem>>, vector<1x128x128xbf16>
    %40 = vector.shape_cast %39 : vector<1x128x128xbf16> to vector<128x128xbf16>
    %cst_24 = arith.constant dense<0.000000e+00> : vector<16x128xf32>
    %41 = tpu.matmul %38, %40, %cst_24 {dimension_numbers = #tpu.dot_dimension_numbers<[1], [0], [0], [1], [0, 0, 1, 1], [], []>} : vector<16x128xbf16>, vector<128x128xbf16>, vector<16x128xf32> -> vector<16x128xf32>
    %c3 = arith.constant 3 : index
    %c0_25 = arith.constant 0 : index
    %c0_26 = arith.constant 0 : index
    %42 = vector.load %arg4[%c3, %c0_25, %c0_26] : memref<10x1x128xf32, #tpu.memory_space<vmem>>, vector<1x1x128xf32>
    %43 = vector.shape_cast %42 : vector<1x1x128xf32> to vector<1x128xf32>
    %44 = vector.broadcast %43 : vector<1x128xf32> to vector<16x128xf32>
    %45 = arith.addf %41, %44 : vector<16x128xf32>
    %46 = arith.negf %45 : vector<16x128xf32>
    %47 = math.exp %46 : vector<16x128xf32>
    %cst_27 = arith.constant 1.000000e+00 : f32
    %48 = vector.broadcast %cst_27 : f32 to vector<16x128xf32>
    %49 = arith.addf %48, %47 : vector<16x128xf32>
    %50 = arith.divf %48, %49 : vector<16x128xf32>
    %51 = arith.truncf %50 : vector<16x128xf32> to vector<16x128xbf16>
    %c3_28 = arith.constant 3 : index
    %c0_29 = arith.constant 0 : index
    %c0_30 = arith.constant 0 : index
    %52 = vector.load %arg3[%c3_28, %c0_29, %c0_30] : memref<9x128x128xbf16, #tpu.memory_space<vmem>>, vector<1x128x128xbf16>
    %53 = vector.shape_cast %52 : vector<1x128x128xbf16> to vector<128x128xbf16>
    %cst_31 = arith.constant dense<0.000000e+00> : vector<16x128xf32>
    %54 = tpu.matmul %51, %53, %cst_31 {dimension_numbers = #tpu.dot_dimension_numbers<[1], [0], [0], [1], [0, 0, 1, 1], [], []>} : vector<16x128xbf16>, vector<128x128xbf16>, vector<16x128xf32> -> vector<16x128xf32>
    %c4 = arith.constant 4 : index
    %c0_32 = arith.constant 0 : index
    %c0_33 = arith.constant 0 : index
    %55 = vector.load %arg4[%c4, %c0_32, %c0_33] : memref<10x1x128xf32, #tpu.memory_space<vmem>>, vector<1x1x128xf32>
    %56 = vector.shape_cast %55 : vector<1x1x128xf32> to vector<1x128xf32>
    %57 = vector.broadcast %56 : vector<1x128xf32> to vector<16x128xf32>
    %58 = arith.addf %54, %57 : vector<16x128xf32>
    %59 = arith.negf %58 : vector<16x128xf32>
    %60 = math.exp %59 : vector<16x128xf32>
    %cst_34 = arith.constant 1.000000e+00 : f32
    %61 = vector.broadcast %cst_34 : f32 to vector<16x128xf32>
    %62 = arith.addf %61, %60 : vector<16x128xf32>
    %63 = arith.divf %61, %62 : vector<16x128xf32>
    %64 = arith.truncf %63 : vector<16x128xf32> to vector<16x128xbf16>
    %c4_35 = arith.constant 4 : index
    %c0_36 = arith.constant 0 : index
    %c0_37 = arith.constant 0 : index
    %65 = vector.load %arg3[%c4_35, %c0_36, %c0_37] : memref<9x128x128xbf16, #tpu.memory_space<vmem>>, vector<1x128x128xbf16>
    %66 = vector.shape_cast %65 : vector<1x128x128xbf16> to vector<128x128xbf16>
    %cst_38 = arith.constant dense<0.000000e+00> : vector<16x128xf32>
    %67 = tpu.matmul %64, %66, %cst_38 {dimension_numbers = #tpu.dot_dimension_numbers<[1], [0], [0], [1], [0, 0, 1, 1], [], []>} : vector<16x128xbf16>, vector<128x128xbf16>, vector<16x128xf32> -> vector<16x128xf32>
    %c5 = arith.constant 5 : index
    %c0_39 = arith.constant 0 : index
    %c0_40 = arith.constant 0 : index
    %68 = vector.load %arg4[%c5, %c0_39, %c0_40] : memref<10x1x128xf32, #tpu.memory_space<vmem>>, vector<1x1x128xf32>
    %69 = vector.shape_cast %68 : vector<1x1x128xf32> to vector<1x128xf32>
    %70 = vector.broadcast %69 : vector<1x128xf32> to vector<16x128xf32>
    %71 = arith.addf %67, %70 : vector<16x128xf32>
    %72 = arith.negf %71 : vector<16x128xf32>
    %73 = math.exp %72 : vector<16x128xf32>
    %cst_41 = arith.constant 1.000000e+00 : f32
    %74 = vector.broadcast %cst_41 : f32 to vector<16x128xf32>
    %75 = arith.addf %74, %73 : vector<16x128xf32>
    %76 = arith.divf %74, %75 : vector<16x128xf32>
    %77 = arith.truncf %76 : vector<16x128xf32> to vector<16x128xbf16>
    %c5_42 = arith.constant 5 : index
    %c0_43 = arith.constant 0 : index
    %c0_44 = arith.constant 0 : index
    %78 = vector.load %arg3[%c5_42, %c0_43, %c0_44] : memref<9x128x128xbf16, #tpu.memory_space<vmem>>, vector<1x128x128xbf16>
    %79 = vector.shape_cast %78 : vector<1x128x128xbf16> to vector<128x128xbf16>
    %cst_45 = arith.constant dense<0.000000e+00> : vector<16x128xf32>
    %80 = tpu.matmul %77, %79, %cst_45 {dimension_numbers = #tpu.dot_dimension_numbers<[1], [0], [0], [1], [0, 0, 1, 1], [], []>} : vector<16x128xbf16>, vector<128x128xbf16>, vector<16x128xf32> -> vector<16x128xf32>
    %c6 = arith.constant 6 : index
    %c0_46 = arith.constant 0 : index
    %c0_47 = arith.constant 0 : index
    %81 = vector.load %arg4[%c6, %c0_46, %c0_47] : memref<10x1x128xf32, #tpu.memory_space<vmem>>, vector<1x1x128xf32>
    %82 = vector.shape_cast %81 : vector<1x1x128xf32> to vector<1x128xf32>
    %83 = vector.broadcast %82 : vector<1x128xf32> to vector<16x128xf32>
    %84 = arith.addf %80, %83 : vector<16x128xf32>
    %85 = arith.negf %84 : vector<16x128xf32>
    %86 = math.exp %85 : vector<16x128xf32>
    %cst_48 = arith.constant 1.000000e+00 : f32
    %87 = vector.broadcast %cst_48 : f32 to vector<16x128xf32>
    %88 = arith.addf %87, %86 : vector<16x128xf32>
    %89 = arith.divf %87, %88 : vector<16x128xf32>
    %90 = arith.truncf %89 : vector<16x128xf32> to vector<16x128xbf16>
    %c6_49 = arith.constant 6 : index
    %c0_50 = arith.constant 0 : index
    %c0_51 = arith.constant 0 : index
    %91 = vector.load %arg3[%c6_49, %c0_50, %c0_51] : memref<9x128x128xbf16, #tpu.memory_space<vmem>>, vector<1x128x128xbf16>
    %92 = vector.shape_cast %91 : vector<1x128x128xbf16> to vector<128x128xbf16>
    %cst_52 = arith.constant dense<0.000000e+00> : vector<16x128xf32>
    %93 = tpu.matmul %90, %92, %cst_52 {dimension_numbers = #tpu.dot_dimension_numbers<[1], [0], [0], [1], [0, 0, 1, 1], [], []>} : vector<16x128xbf16>, vector<128x128xbf16>, vector<16x128xf32> -> vector<16x128xf32>
    %c7 = arith.constant 7 : index
    %c0_53 = arith.constant 0 : index
    %c0_54 = arith.constant 0 : index
    %94 = vector.load %arg4[%c7, %c0_53, %c0_54] : memref<10x1x128xf32, #tpu.memory_space<vmem>>, vector<1x1x128xf32>
    %95 = vector.shape_cast %94 : vector<1x1x128xf32> to vector<1x128xf32>
    %96 = vector.broadcast %95 : vector<1x128xf32> to vector<16x128xf32>
    %97 = arith.addf %93, %96 : vector<16x128xf32>
    %98 = arith.negf %97 : vector<16x128xf32>
    %99 = math.exp %98 : vector<16x128xf32>
    %cst_55 = arith.constant 1.000000e+00 : f32
    %100 = vector.broadcast %cst_55 : f32 to vector<16x128xf32>
    %101 = arith.addf %100, %99 : vector<16x128xf32>
    %102 = arith.divf %100, %101 : vector<16x128xf32>
    %103 = arith.truncf %102 : vector<16x128xf32> to vector<16x128xbf16>
    %c7_56 = arith.constant 7 : index
    %c0_57 = arith.constant 0 : index
    %c0_58 = arith.constant 0 : index
    %104 = vector.load %arg3[%c7_56, %c0_57, %c0_58] : memref<9x128x128xbf16, #tpu.memory_space<vmem>>, vector<1x128x128xbf16>
    %105 = vector.shape_cast %104 : vector<1x128x128xbf16> to vector<128x128xbf16>
    %cst_59 = arith.constant dense<0.000000e+00> : vector<16x128xf32>
    %106 = tpu.matmul %103, %105, %cst_59 {dimension_numbers = #tpu.dot_dimension_numbers<[1], [0], [0], [1], [0, 0, 1, 1], [], []>} : vector<16x128xbf16>, vector<128x128xbf16>, vector<16x128xf32> -> vector<16x128xf32>
    %c8 = arith.constant 8 : index
    %c0_60 = arith.constant 0 : index
    %c0_61 = arith.constant 0 : index
    %107 = vector.load %arg4[%c8, %c0_60, %c0_61] : memref<10x1x128xf32, #tpu.memory_space<vmem>>, vector<1x1x128xf32>
    %108 = vector.shape_cast %107 : vector<1x1x128xf32> to vector<1x128xf32>
    %109 = vector.broadcast %108 : vector<1x128xf32> to vector<16x128xf32>
    %110 = arith.addf %106, %109 : vector<16x128xf32>
    %111 = arith.negf %110 : vector<16x128xf32>
    %112 = math.exp %111 : vector<16x128xf32>
    %cst_62 = arith.constant 1.000000e+00 : f32
    %113 = vector.broadcast %cst_62 : f32 to vector<16x128xf32>
    %114 = arith.addf %113, %112 : vector<16x128xf32>
    %115 = arith.divf %113, %114 : vector<16x128xf32>
    %116 = arith.truncf %115 : vector<16x128xf32> to vector<16x128xbf16>
    %c8_63 = arith.constant 8 : index
    %c0_64 = arith.constant 0 : index
    %c0_65 = arith.constant 0 : index
    %117 = vector.load %arg3[%c8_63, %c0_64, %c0_65] : memref<9x128x128xbf16, #tpu.memory_space<vmem>>, vector<1x128x128xbf16>
    %118 = vector.shape_cast %117 : vector<1x128x128xbf16> to vector<128x128xbf16>
    %cst_66 = arith.constant dense<0.000000e+00> : vector<16x128xf32>
    %119 = tpu.matmul %116, %118, %cst_66 {dimension_numbers = #tpu.dot_dimension_numbers<[1], [0], [0], [1], [0, 0, 1, 1], [], []>} : vector<16x128xbf16>, vector<128x128xbf16>, vector<16x128xf32> -> vector<16x128xf32>
    %c9 = arith.constant 9 : index
    %c0_67 = arith.constant 0 : index
    %c0_68 = arith.constant 0 : index
    %120 = vector.load %arg4[%c9, %c0_67, %c0_68] : memref<10x1x128xf32, #tpu.memory_space<vmem>>, vector<1x1x128xf32>
    %121 = vector.shape_cast %120 : vector<1x1x128xf32> to vector<1x128xf32>
    %122 = vector.broadcast %121 : vector<1x128xf32> to vector<16x128xf32>
    %123 = arith.addf %119, %122 : vector<16x128xf32>
    %124 = tpu.iota {dimensions = array<i32: 1>} : vector<16x128xi32>
    %c8_i32 = arith.constant 8 : i32
    %125 = vector.broadcast %c8_i32 : i32 to vector<16x128xi32>
    %126 = arith.cmpi slt, %124, %125 : vector<16x128xi32>
    %cst_69 = arith.constant -1.000000e+30 : f32
    %127 = vector.broadcast %cst_69 : f32 to vector<16x128xf32>
    %128 = arith.select %126, %123, %127 : vector<16x128xi1>, vector<16x128xf32>
    %cst_70 = arith.constant dense<0xFF800000> : vector<16xf32>
    %129 = vector.multi_reduction <maximumf>, %128, %cst_70 [1] : vector<16x128xf32> to vector<16xf32>
    %130 = vector.shape_cast %129 : vector<16xf32> to vector<16x1xf32>
    %131 = vector.broadcast %130 : vector<16x1xf32> to vector<16x128xf32>
    %132 = arith.subf %128, %131 : vector<16x128xf32>
    %133 = math.exp %132 : vector<16x128xf32>
    %cst_71 = arith.constant dense<0.000000e+00> : vector<16xf32>
    %134 = vector.multi_reduction <add>, %133, %cst_71 [1] : vector<16x128xf32> to vector<16xf32>
    %135 = vector.shape_cast %134 : vector<16xf32> to vector<16x1xf32>
    %136 = math.log %135 : vector<16x1xf32>
    %137 = vector.extract_strided_slice %132 {offsets = [0, 0], sizes = [16, 8], strides = [1, 1]} : vector<16x128xf32> to vector<16x8xf32>
    %138 = vector.broadcast %136 : vector<16x1xf32> to vector<16x8xf32>
    %139 = arith.subf %137, %138 : vector<16x8xf32>
    %c0_72 = arith.constant 0 : index
    %c0_73 = arith.constant 0 : index
    %140 = vector.load %arg5[%c0_72, %c0_73] : memref<16x8xf32, #tpu.memory_space<vmem>>, vector<16x8xf32>
    tpu.vector_store %arg5[%c0_72, %c0_73], %139 {strides = array<i32>} : memref<16x8xf32, #tpu.memory_space<vmem>>, vector<16x8xf32>,
    return
  }
  func.func @transform_0(%arg0: i32) -> (i32, i32) {
    %c0_i32 = arith.constant 0 : i32
    %c0_i32_0 = arith.constant 0 : i32
    return %arg0, %c0_i32 : i32, i32
  }
  func.func @transform_1(%arg0: i32) -> (i32, i32) {
    %c0_i32 = arith.constant 0 : i32
    %c0_i32_0 = arith.constant 0 : i32
    %c0_i32_1 = arith.constant 0 : i32
    return %c0_i32, %c0_i32_0 : i32, i32
  }
  func.func @transform_2(%arg0: i32) -> (i32, i32, i32) {
    %c0_i32 = arith.constant 0 : i32
    %c0_i32_0 = arith.constant 0 : i32
    %c0_i32_1 = arith.constant 0 : i32
    %c0_i32_2 = arith.constant 0 : i32
    return %c0_i32, %c0_i32_0, %c0_i32_1 : i32, i32, i32
  }
  func.func @transform_3(%arg0: i32) -> (i32, i32, i32) {
    %c0_i32 = arith.constant 0 : i32
    %c0_i32_0 = arith.constant 0 : i32
    %c0_i32_1 = arith.constant 0 : i32
    %c0_i32_2 = arith.constant 0 : i32
    return %c0_i32, %c0_i32_0, %c0_i32_1 : i32, i32, i32
  }
  func.func @transform_4(%arg0: i32) -> (i32, i32) {
    %c0_i32 = arith.constant 0 : i32
    %c0_i32_0 = arith.constant 0 : i32
    return %arg0, %c0_i32 : i32, i32
  }
}

</mosaic_0001>

<bundles_post_ra>
// kernel: network_forward.1
= control target key start
LH: loop header
LB: loop body
LE: loop exit
PB: predicated region body
PF: predicated region fallthrough
CT: control target
= control target key end

     0   :  { %9 = vsyncpa [#allocation3], 0  ;;  %s1838_s15 = smov [#allocation2]   ;;  %s2015_s0 = inlined_call_operand.vmem [shape: bf16[16,16], index: 0, kind: input, shape index: {}]   ;;  %s2016_s1 = inlined_call_operand.vmem [shape: bf16[16,128], index: 1, kind: input, shape index: {}]   ;;  %s2017_s2 = inlined_call_operand.hbm [shape: bf16[9,128,128], index: 2, kind: input, shape index: {}]   ;;  %s2018_s3 = inlined_call_operand.vmem [shape: f32[10,1,128], index: 3, kind: input, shape index: {}]   ;;  %s2019_s4 = inlined_call_operand.vmem [shape: f32[16,8], index: 4, kind: output, shape index: {}]  }
   0x1   :  { %s19_s16 = sshll.u32 %s1838_s15, 4  ;;  %s1814_s19 = scalar_lea.hbm %s2017_s2, 9216  ;;  %s20_s16 = int_to_ptr.vmem [resolvable:$true] %s19_s16 }
   0x2   :  { %p1815_p0 = scmp.ne.s32.totalorder %s2017_s2, %s1814_s19  ;;  %p1818_p1 = scmp.lt.u32.totalorder %s1814_s19, %s2017_s2 }
   0x4   :  { %p1820_p2 = pnand %p1818_p1, %p1815_p0 }
   0x6   :  { %1823 = shalt.err (!%p1820_p2)
}
   0x7   :  { %s1824_s24 = scalar_lea.vmem %s20_s16, 9216  ;;  %p1829_p4 = scmp.lt.s32.totalorder %s20_s16, %s20_s16 }
   0x8   :  { %p1825_p3 = scmp.ne.s32.totalorder %s20_s16, %s1824_s24  ;;  %p1830_p5 = scmp.lt.s32.totalorder %s1824_s24, %s1824_s24 }
   0xa   :  { %p1831_p6 = por %p1830_p5, %p1829_p4 }
   0xc   :  { %p1832_p7 = pnand %p1831_p6, %p1825_p3 }
   0xe   :  { %1835 = shalt.err (!%p1832_p7)
}
   0xf   :  { %s1839_s25 = smov 64   ;;  %s1840_s26 = smov 4  }
  0x10   :  { %25 = dma.hbm_to_vmem [thread:$0]  %s2017_s2, 9216, %s20_s16, [#allocation3], %s1839_s25, %s1839_s25, %s1840_s26  }
  0x11   :  { %1836 = dma.done.wait [#allocation3], 9216  }
  0x12   :  { %1837 = vsyncadd [#allocation3], 4294958080  ;;  %v1841_v0 = vmov 0.0   ;;  %vm1842_vm0 = vmmov 0   ;;  %v1660_v1 = vld [vmem:[%s2016_s1] sm:$0xff]   ;;  %vm54_vm1 = vcmask 130048  }
  0x13   :  { %1469 = vmatprep.subr.bf16.mxu0 %v1841_v0  ;;  %1471 = vmatprep.mubr.msk.bf16.mxu0 %vm1842_vm0, %v1841_v0  ;;  %v1661_v2 = vld [vmem:[%s2015_s0] sm:$0xff]   ;;  %v1662_v3 = vld [vmem:[#allocation2] sm:$0xff]   ;;  %v1664_v5 = vld [vmem:[#allocation2 + $0x10] sm:$0xff]   ;;  %vm1266_vm3 = vcmask 64512  }
  0x14   :  { %1475 = vmatprep.subr.bf16.mxu1 %v1841_v0  ;;  %1491 = vmatprep.mubr.msk.bf16.mxu1 %vm1842_vm0, %v1841_v0  ;;  %v1663_v4 = vld [vmem:[#allocation2 + $0x8] sm:$0xff]   ;;  %v1665_v6 = vld [vmem:[#allocation2 + $0x18] sm:$0xff]   ;;  %v1666_v7 = vld [vmem:[#allocation2 + $0x20] sm:$0xff]  }
  0x15   :  { %1470 = vmatpush3.bf16.msra.mxu0 %v1660_v1  ;;  %1476 = vmatpush3.bf16.msra.mxu1 %v1662_v3  ;;  %v1667_v8 = vld [vmem:[#allocation2 + $0x28] sm:$0xff]   ;;  %v1668_v9 = vld [vmem:[#allocation2 + $0x30] sm:$0xff]   ;;  %v1669_v10 = vld [vmem:[#allocation2 + $0x38] sm:$0xff]  }
  0x16   :  { %1495 = vmatprep.subr.bf16.mxu0 %v1841_v0  ;;  %1477 = vmatprep.subr.bf16.mxu1 %v1841_v0  ;;  %v1274_v11 = vld [vmem:[%s2018_s3] ss:$0 sm:$0xff]  ;;  %v1670_v27 = vld [vmem:[#allocation2 + $0x40] sm:$0xff]   ;;  %v1672_v29 = vld [vmem:[#allocation2 + $0x50] sm:$0xff]  }
  0x17   :  { %v1671_v28 = vld [vmem:[#allocation2 + $0x48] sm:$0xff]   ;;  %v1673_v30 = vld [vmem:[#allocation2 + $0x58] sm:$0xff]   ;;  %v1674_v31 = vld [vmem:[#allocation2 + $0x60] sm:$0xff]  }
  0x18   :  { %1472 = vmatmul.mubr.msk.bf16.vlgmr.msra.gmra.mrb[0].mxu0 %vm54_vm1, %v1661_v2  ;;  %v1675_v32 = vld [vmem:[#allocation2 + $0x68] sm:$0xff]   ;;  %v1676_v33 = vld [vmem:[#allocation2 + $0x70] sm:$0xff]   ;;  %v1677_v34 = vld [vmem:[#allocation2 + $0x78] sm:$0xff]  }
  0x19   :  { %1511 = vmatprep.mubr.msk.bf16.mxu0 %vm1842_vm0, %v1841_v0  ;;  %1478 = vmatpush3.bf16.msra.mxu1 %v1663_v4  ;;  %v1281_v35 = vld [vmem:[%s2018_s3 + $0x1] ss:$0 sm:$0xff]  ;;  %v1678_v51 = vld [vmem:[#allocation2 + $0x80] sm:$0xff]   ;;  %v1680_v53 = vld [vmem:[#allocation2 + $0x90] sm:$0xff]  }
  0x1a   :  { %1479 = vmatprep.subr.bf16.mxu1 %v1841_v0  ;;  %1496 = vmatpush3.bf16.msra.mxu0 %v1670_v27  ;;  %v1679_v52 = vld [vmem:[#allocation2 + $0x88] sm:$0xff]   ;;  %v1681_v54 = vld [vmem:[#allocation2 + $0x98] sm:$0xff]   ;;  %v1682_v55 = vld [vmem:[#allocation2 + $0xa0] sm:$0xff]  }
  0x1b   :  { %1497 = vmatprep.subr.bf16.mxu0 %v1841_v0  ;;  %v1683_v56 = vld [vmem:[#allocation2 + $0xa8] sm:$0xff]   ;;  %v1684_v57 = vld [vmem:[#allocation2 + $0xb0] sm:$0xff]   ;;  %v1685_v58 = vld [vmem:[#allocation2 + $0xb8] sm:$0xff]  }
  0x1c   :  { %v1293_v59 = vld [vmem:[%s2018_s3 + $0x2] ss:$0 sm:$0xff] }
  0x1d   :  { %1480 = vmatpush3.bf16.msra.mxu1 %v1664_v5 }
  0x1e   :  { %1481 = vmatprep.subr.bf16.mxu1 %v1841_v0  ;;  %1498 = vmatpush3.bf16.msra.mxu0 %v1671_v28 }
  0x1f   :  { %1499 = vmatprep.subr.bf16.mxu0 %v1841_v0 }
  0x21   :  { %1482 = vmatpush3.bf16.msra.mxu1 %v1665_v6 }
  0x22   :  { %1483 = vmatprep.subr.bf16.mxu1 %v1841_v0  ;;  %1500 = vmatpush3.bf16.msra.mxu0 %v1672_v29 }
  0x23   :  { %1501 = vmatprep.subr.bf16.mxu0 %v1841_v0 }
  0x25   :  { %1484 = vmatpush3.bf16.msra.mxu1 %v1666_v7 }
  0x26   :  { %1485 = vmatprep.subr.bf16.mxu1 %v1841_v0  ;;  %1502 = vmatpush3.bf16.msra.mxu0 %v1673_v30 }
  0x27   :  { %1503 = vmatprep.subr.bf16.mxu0 %v1841_v0 }
  0x29   :  { %1486 = vmatpush3.bf16.msra.mxu1 %v1667_v8 }
  0x2a   :  { %1487 = vmatprep.subr.bf16.mxu1 %v1841_v0  ;;  %1504 = vmatpush3.bf16.msra.mxu0 %v1674_v31 }
  0x2b   :  { %1505 = vmatprep.subr.bf16.mxu0 %v1841_v0 }
  0x2d   :  { %1488 = vmatpush3.bf16.msra.mxu1 %v1668_v9 }
  0x2e   :  { %1489 = vmatprep.subr.bf16.mxu1 %v1841_v0  ;;  %1506 = vmatpush3.bf16.msra.mxu0 %v1675_v32 }
  0x2f   :  { %1507 = vmatprep.subr.bf16.mxu0 %v1841_v0 }
  0x31   :  { %1490 = vmatpush3.bf16.msra.mxu1 %v1669_v10 }
  0x32   :  { %1515 = vmatprep.subr.bf16.mxu1 %v1841_v0  ;;  %1508 = vmatpush3.bf16.msra.mxu0 %v1676_v33 }
  0x33   :  { %1509 = vmatprep.subr.bf16.mxu0 %v1841_v0 }
  0x36   :  { %1510 = vmatpush3.bf16.msra.mxu0 %v1677_v34 }
  0x37   :  { %1535 = vmatprep.subr.bf16.mxu0 %v1841_v0 }
  0xeb   :  { %v92_v12 = vpop.f32.mrb[0].mxu0 }
  0xec   :  { %v93_v13 = vadd.f32 %v1274_v11, %v92_v12  ;;  %v1473_v14 = vpop.f32.mrb[1].mxu0  ;;  %v1686_v12 = vld [vmem:[#allocation2 + $0xc0] sm:$0xff]  }
  0xed   :  { %v95_v15 = vpop.f32.mrb[2].mxu0  ;;  %v1688_v14 = vld [vmem:[#allocation2 + $0xd0] sm:$0xff]  }
  0xee   :  { %v1278_v16 = vmul.f32 -1.442695, %v93_v13  ;;  %v96_v17 = vadd.f32 %v1274_v11, %v95_v15  ;;  %v1474_v18 = vpop.f32.mrb[3].mxu0  ;;  %v1687_v13 = vld [vmem:[#allocation2 + $0xc8] sm:$0xff]   ;;  %v1689_v15 = vld [vmem:[#allocation2 + $0xd8] sm:$0xff]  }
  0xef   :  { %v1692_v18 = vld [vmem:[#allocation2 + $0xf0] sm:$0xff]  }
  0xf0   :  { %1734 = vpow2.f32 %v1278_v16  ;;  %v1279_v19 = vmul.f32 -1.442695, %v96_v17  ;;  %v1690_v16 = vld [vmem:[#allocation2 + $0xe0] sm:$0xff]   ;;  %v1691_v17 = vld [vmem:[#allocation2 + $0xe8] sm:$0xff]  }
  0xf2   :  { %1736 = vpow2.f32 %v1279_v19  ;;  %v1693_v19 = vld [vmem:[#allocation2 + $0xf8] sm:$0xff]  }
  0xfa   :  { %v1735_v20 = vpop.eup %1734 }
  0xfb   :  { %v105_v21 = vadd.f32 1.0, %v1735_v20  ;;  %v1305_v20 = vld [vmem:[%s2018_s3 + $0x3] ss:$0 sm:$0xff] }
  0xfc   :  { %v1737_v22 = vpop.eup %1736 }
  0xfd   :  { %v106_v23 = vadd.f32 1.0, %v1737_v22  ;;  %1738 = vrcp.f32 %v105_v21 }
  0xff   :  { %1740 = vrcp.f32 %v106_v23 }
 0x107   :  { %v1739_v24 = vpop.eup %1738 }
 0x109   :  { %v1741_v25 = vpop.eup %1740 }
 0x10a   :  { %v111_v26 = vpack.c.bf16 %v1741_v25, %v1739_v24 }
 0x10c   :  { %1492 = vmatmul.mubr.bf16.vlgmr.msra.gmra.mrb[0].mxu1 %v111_v26 }
 0x10d   :  { %1531 = vmatprep.mubr.msk.bf16.mxu1 %vm1842_vm0, %v1841_v0  ;;  %1516 = vmatpush3.bf16.msra.mxu1 %v1678_v51 }
 0x10e   :  { %1517 = vmatprep.subr.bf16.mxu1 %v1841_v0 }
 0x111   :  { %1518 = vmatpush3.bf16.msra.mxu1 %v1679_v52 }
 0x112   :  { %1519 = vmatprep.subr.bf16.mxu1 %v1841_v0 }
 0x115   :  { %1520 = vmatpush3.bf16.msra.mxu1 %v1680_v53 }
 0x116   :  { %1521 = vmatprep.subr.bf16.mxu1 %v1841_v0 }
 0x119   :  { %1522 = vmatpush3.bf16.msra.mxu1 %v1681_v54 }
 0x11a   :  { %1523 = vmatprep.subr.bf16.mxu1 %v1841_v0 }
 0x11d   :  { %1524 = vmatpush3.bf16.msra.mxu1 %v1682_v55 }
 0x11e   :  { %1525 = vmatprep.subr.bf16.mxu1 %v1841_v0 }
 0x121   :  { %1526 = vmatpush3.bf16.msra.mxu1 %v1683_v56 }
 0x122   :  { %1527 = vmatprep.subr.bf16.mxu1 %v1841_v0 }
 0x125   :  { %1528 = vmatpush3.bf16.msra.mxu1 %v1684_v57 }
 0x126   :  { %1529 = vmatprep.subr.bf16.mxu1 %v1841_v0 }
 0x129   :  { %1530 = vmatpush3.bf16.msra.mxu1 %v1685_v58 }
 0x12a   :  { %1555 = vmatprep.subr.bf16.mxu1 %v1841_v0 }
 0x1df   :  { %v218_v36 = vpop.f32.mrb[0].mxu1 }
 0x1e0   :  { %v219_v37 = vadd.f32 %v1281_v35, %v218_v36  ;;  %v1493_v38 = vpop.f32.mrb[1].mxu1  ;;  %v1694_v36 = vld [vmem:[#allocation2 + $0x100] sm:$0xff]  }
 0x1e1   :  { %v221_v39 = vpop.f32.mrb[2].mxu1  ;;  %v1696_v38 = vld [vmem:[#allocation2 + $0x110] sm:$0xff]  }
 0x1e2   :  { %v1290_v40 = vmul.f32 -1.442695, %v219_v37  ;;  %v222_v41 = vadd.f32 %v1281_v35, %v221_v39  ;;  %v1494_v42 = vpop.f32.mrb[3].mxu1  ;;  %v1695_v37 = vld [vmem:[#allocation2 + $0x108] sm:$0xff]   ;;  %v1697_v39 = vld [vmem:[#allocation2 + $0x118] sm:$0xff]  }
 0x1e3   :  { %v1700_v42 = vld [vmem:[#allocation2 + $0x130] sm:$0xff]  }
 0x1e4   :  { %1742 = vpow2.f32 %v1290_v40  ;;  %v1291_v43 = vmul.f32 -1.442695, %v222_v41  ;;  %v1698_v40 = vld [vmem:[#allocation2 + $0x120] sm:$0xff]   ;;  %v1699_v41 = vld [vmem:[#allocation2 + $0x128] sm:$0xff]  }
 0x1e6   :  { %1744 = vpow2.f32 %v1291_v43  ;;  %v1701_v43 = vld [vmem:[#allocation2 + $0x138] sm:$0xff]  }
 0x1ee   :  { %v1743_v44 = vpop.eup %1742 }
 0x1ef   :  { %v231_v45 = vadd.f32 1.0, %v1743_v44  ;;  %v1317_v44 = vld [vmem:[%s2018_s3 + $0x4] ss:$0 sm:$0xff] }
 0x1f0   :  { %v1745_v46 = vpop.eup %1744 }
 0x1f1   :  { %v232_v47 = vadd.f32 1.0, %v1745_v46  ;;  %1746 = vrcp.f32 %v231_v45 }
 0x1f3   :  { %1748 = vrcp.f32 %v232_v47 }
 0x1fb   :  { %v1747_v48 = vpop.eup %1746 }
 0x1fd   :  { %v1749_v49 = vpop.eup %1748 }
 0x1fe   :  { %v237_v50 = vpack.c.bf16 %v1749_v49, %v1747_v48 }
 0x200   :  { %1512 = vmatmul.mubr.bf16.vlgmr.msra.gmra.mrb[4].mxu0 %v237_v50 }
 0x201   :  { %1551 = vmatprep.mubr.msk.bf16.mxu0 %vm1842_vm0, %v1841_v0  ;;  %1536 = vmatpush3.bf16.msra.mxu0 %v1686_v12 }
 0x202   :  { %1537 = vmatprep.subr.bf16.mxu0 %v1841_v0 }
 0x205   :  { %1538 = vmatpush3.bf16.msra.mxu0 %v1687_v13 }
 0x206   :  { %1539 = vmatprep.subr.bf16.mxu0 %v1841_v0 }
 0x209   :  { %1540 = vmatpush3.bf16.msra.mxu0 %v1688_v14 }
 0x20a   :  { %1541 = vmatprep.subr.bf16.mxu0 %v1841_v0 }
 0x20d   :  { %1542 = vmatpush3.bf16.msra.mxu0 %v1689_v15 }
 0x20e   :  { %1543 = vmatprep.subr.bf16.mxu0 %v1841_v0 }
 0x211   :  { %1544 = vmatpush3.bf16.msra.mxu0 %v1690_v16 }
 0x212   :  { %1545 = vmatprep.subr.bf16.mxu0 %v1841_v0 }
 0x215   :  { %1546 = vmatpush3.bf16.msra.mxu0 %v1691_v17 }
 0x216   :  { %1547 = vmatprep.subr.bf16.mxu0 %v1841_v0 }
 0x219   :  { %1548 = vmatpush3.bf16.msra.mxu0 %v1692_v18 }
 0x21a   :  { %1549 = vmatprep.subr.bf16.mxu0 %v1841_v0 }
 0x21d   :  { %1550 = vmatpush3.bf16.msra.mxu0 %v1693_v19 }
 0x21e   :  { %1575 = vmatprep.subr.bf16.mxu0 %v1841_v0 }
 0x2d3   :  { %v345_v60 = vpop.f32.mrb[4].mxu0 }
 0x2d4   :  { %v346_v61 = vadd.f32 %v1293_v59, %v345_v60  ;;  %v1513_v62 = vpop.f32.mrb[5].mxu0  ;;  %v1702_v60 = vld [vmem:[#allocation2 + $0x140] sm:$0xff]  }
 0x2d5   :  { %v348_v63 = vpop.f32.mrb[6].mxu0  ;;  %v1704_v62 = vld [vmem:[#allocation2 + $0x150] sm:$0xff]  }
 0x2d6   :  { %v1302_v1 = vmul.f32 -1.442695, %v346_v61  ;;  %v349_v2 = vadd.f32 %v1293_v59, %v348_v63  ;;  %v1514_v3 = vpop.f32.mrb[7].mxu0  ;;  %v1703_v61 = vld [vmem:[#allocation2 + $0x148] sm:$0xff]   ;;  %v1705_v63 = vld [vmem:[#allocation2 + $0x158] sm:$0xff]  }
 0x2d7   :  { %v1708_v3 = vld [vmem:[#allocation2 + $0x170] sm:$0xff]  }
 0x2d8   :  { %1750 = vpow2.f32 %v1302_v1  ;;  %v1303_v4 = vmul.f32 -1.442695, %v349_v2  ;;  %v1706_v1 = vld [vmem:[#allocation2 + $0x160] sm:$0xff]   ;;  %v1707_v2 = vld [vmem:[#allocation2 + $0x168] sm:$0xff]  }
 0x2da   :  { %1752 = vpow2.f32 %v1303_v4  ;;  %v1709_v4 = vld [vmem:[#allocation2 + $0x178] sm:$0xff]  }
 0x2e2   :  { %v1751_v5 = vpop.eup %1750 }
 0x2e3   :  { %v358_v6 = vadd.f32 1.0, %v1751_v5  ;;  %v1329_v5 = vld [vmem:[%s2018_s3 + $0x5] ss:$0 sm:$0xff] }
 0x2e4   :  { %v1753_v7 = vpop.eup %1752 }
 0x2e5   :  { %v359_v8 = vadd.f32 1.0, %v1753_v7  ;;  %1754 = vrcp.f32 %v358_v6 }
 0x2e7   :  { %1756 = vrcp.f32 %v359_v8 }
 0x2ef   :  { %v1755_v9 = vpop.eup %1754 }
 0x2f1   :  { %v1757_v10 = vpop.eup %1756 }
 0x2f2   :  { %v364_v11 = vpack.c.bf16 %v1757_v10, %v1755_v9 }
 0x2f4   :  { %1532 = vmatmul.mubr.bf16.vlgmr.msra.gmra.mrb[4].mxu1 %v364_v11 }
 0x2f5   :  { %1571 = vmatprep.mubr.msk.bf16.mxu1 %vm1842_vm0, %v1841_v0  ;;  %1556 = vmatpush3.bf16.msra.mxu1 %v1694_v36 }
 0x2f6   :  { %1557 = vmatprep.subr.bf16.mxu1 %v1841_v0 }
 0x2f9   :  { %1558 = vmatpush3.bf16.msra.mxu1 %v1695_v37 }
 0x2fa   :  { %1559 = vmatprep.subr.bf16.mxu1 %v1841_v0 }
 0x2fd   :  { %1560 = vmatpush3.bf16.msra.mxu1 %v1696_v38 }
 0x2fe   :  { %1561 = vmatprep.subr.bf16.mxu1 %v1841_v0 }
 0x301   :  { %1562 = vmatpush3.bf16.msra.mxu1 %v1697_v39 }
 0x302   :  { %1563 = vmatprep.subr.bf16.mxu1 %v1841_v0 }
 0x305   :  { %1564 = vmatpush3.bf16.msra.mxu1 %v1698_v40 }
 0x306   :  { %1565 = vmatprep.subr.bf16.mxu1 %v1841_v0 }
 0x309   :  { %1566 = vmatpush3.bf16.msra.mxu1 %v1699_v41 }
 0x30a   :  { %1567 = vmatprep.subr.bf16.mxu1 %v1841_v0 }
 0x30d   :  { %1568 = vmatpush3.bf16.msra.mxu1 %v1700_v42 }
 0x30e   :  { %1569 = vmatprep.subr.bf16.mxu1 %v1841_v0 }
 0x311   :  { %1570 = vmatpush3.bf16.msra.mxu1 %v1701_v43 }
 0x312   :  { %1595 = vmatprep.subr.bf16.mxu1 %v1841_v0 }
 0x3c7   :  { %v472_v21 = vpop.f32.mrb[4].mxu1 }
 0x3c8   :  { %v473_v22 = vadd.f32 %v1305_v20, %v472_v21  ;;  %v1533_v23 = vpop.f32.mrb[5].mxu1  ;;  %v1710_v21 = vld [vmem:[#allocation2 + $0x180] sm:$0xff]  }
 0x3c9   :  { %v475_v24 = vpop.f32.mrb[6].mxu1  ;;  %v1712_v23 = vld [vmem:[#allocation2 + $0x190] sm:$0xff]  }
 0x3ca   :  { %v1314_v25 = vmul.f32 -1.442695, %v473_v22  ;;  %v476_v26 = vadd.f32 %v1305_v20, %v475_v24  ;;  %v1534_v27 = vpop.f32.mrb[7].mxu1  ;;  %v1711_v22 = vld [vmem:[#allocation2 + $0x188] sm:$0xff]   ;;  %v1713_v24 = vld [vmem:[#allocation2 + $0x198] sm:$0xff]  }
 0x3cb   :  { %v1716_v27 = vld [vmem:[#allocation2 + $0x1b0] sm:$0xff]  }
 0x3cc   :  { %1758 = vpow2.f32 %v1314_v25  ;;  %v1315_v28 = vmul.f32 -1.442695, %v476_v26  ;;  %v1714_v25 = vld [vmem:[#allocation2 + $0x1a0] sm:$0xff]   ;;  %v1715_v26 = vld [vmem:[#allocation2 + $0x1a8] sm:$0xff]  }
 0x3ce   :  { %1760 = vpow2.f32 %v1315_v28  ;;  %v1717_v28 = vld [vmem:[#allocation2 + $0x1b8] sm:$0xff]  }
 0x3d6   :  { %v1759_v29 = vpop.eup %1758 }
 0x3d7   :  { %v485_v30 = vadd.f32 1.0, %v1759_v29  ;;  %v1341_v29 = vld [vmem:[%s2018_s3 + $0x6] ss:$0 sm:$0xff] }
 0x3d8   :  { %v1761_v31 = vpop.eup %1760 }
 0x3d9   :  { %v486_v32 = vadd.f32 1.0, %v1761_v31  ;;  %1762 = vrcp.f32 %v485_v30 }
 0x3db   :  { %1764 = vrcp.f32 %v486_v32 }
 0x3e3   :  { %v1763_v33 = vpop.eup %1762 }
 0x3e5   :  { %v1765_v34 = vpop.eup %1764 }
 0x3e6   :  { %v491_v35 = vpack.c.bf16 %v1765_v34, %v1763_v33 }
 0x3e8   :  { %1552 = vmatmul.mubr.bf16.vlgmr.msra.gmra.mrb[8].mxu0 %v491_v35 }
 0x3e9   :  { %1591 = vmatprep.mubr.msk.bf16.mxu0 %vm1842_vm0, %v1841_v0  ;;  %1576 = vmatpush3.bf16.msra.mxu0 %v1702_v60 }
 0x3ea   :  { %1577 = vmatprep.subr.bf16.mxu0 %v1841_v0 }
 0x3ed   :  { %1578 = vmatpush3.bf16.msra.mxu0 %v1703_v61 }
 0x3ee   :  { %1579 = vmatprep.subr.bf16.mxu0 %v1841_v0 }
 0x3f1   :  { %1580 = vmatpush3.bf16.msra.mxu0 %v1704_v62 }
 0x3f2   :  { %1581 = vmatprep.subr.bf16.mxu0 %v1841_v0 }
 0x3f5   :  { %1582 = vmatpush3.bf16.msra.mxu0 %v1705_v63 }
 0x3f6   :  { %1583 = vmatprep.subr.bf16.mxu0 %v1841_v0 }
 0x3f9   :  { %1584 = vmatpush3.bf16.msra.mxu0 %v1706_v1 }
 0x3fa   :  { %1585 = vmatprep.subr.bf16.mxu0 %v1841_v0 }
 0x3fd   :  { %1586 = vmatpush3.bf16.msra.mxu0 %v1707_v2 }
 0x3fe   :  { %1587 = vmatprep.subr.bf16.mxu0 %v1841_v0 }
 0x401   :  { %1588 = vmatpush3.bf16.msra.mxu0 %v1708_v3 }
 0x402   :  { %1589 = vmatprep.subr.bf16.mxu0 %v1841_v0 }
 0x405   :  { %1590 = vmatpush3.bf16.msra.mxu0 %v1709_v4 }
 0x406   :  { %1615 = vmatprep.subr.bf16.mxu0 %v1841_v0 }
 0x4bb   :  { %v599_v45 = vpop.f32.mrb[8].mxu0 }
 0x4bc   :  { %v600_v46 = vadd.f32 %v1317_v44, %v599_v45  ;;  %v1553_v47 = vpop.f32.mrb[9].mxu0  ;;  %v1718_v45 = vld [vmem:[#allocation2 + $0x1c0] sm:$0xff]  }
 0x4bd   :  { %v602_v48 = vpop.f32.mrb[10].mxu0  ;;  %v1720_v47 = vld [vmem:[#allocation2 + $0x1d0] sm:$0xff]  }
 0x4be   :  { %v1326_v49 = vmul.f32 -1.442695, %v600_v46  ;;  %v603_v50 = vadd.f32 %v1317_v44, %v602_v48  ;;  %v1554_v51 = vpop.f32.mrb[11].mxu0  ;;  %v1719_v46 = vld [vmem:[#allocation2 + $0x1c8] sm:$0xff]   ;;  %v1721_v48 = vld [vmem:[#allocation2 + $0x1d8] sm:$0xff]  }
 0x4bf   :  { %v1724_v51 = vld [vmem:[#allocation2 + $0x1f0] sm:$0xff]  }
 0x4c0   :  { %1766 = vpow2.f32 %v1326_v49  ;;  %v1327_v52 = vmul.f32 -1.442695, %v603_v50  ;;  %v1722_v49 = vld [vmem:[#allocation2 + $0x1e0] sm:$0xff]   ;;  %v1723_v50 = vld [vmem:[#allocation2 + $0x1e8] sm:$0xff]  }
 0x4c2   :  { %1768 = vpow2.f32 %v1327_v52  ;;  %v1725_v52 = vld [vmem:[#allocation2 + $0x1f8] sm:$0xff]  }
 0x4ca   :  { %v1767_v53 = vpop.eup %1766 }
 0x4cb   :  { %v612_v54 = vadd.f32 1.0, %v1767_v53  ;;  %v1353_v53 = vld [vmem:[%s2018_s3 + $0x7] ss:$0 sm:$0xff] }
 0x4cc   :  { %v1769_v55 = vpop.eup %1768 }
 0x4cd   :  { %v613_v56 = vadd.f32 1.0, %v1769_v55  ;;  %1770 = vrcp.f32 %v612_v54 }
 0x4cf   :  { %1772 = vrcp.f32 %v613_v56 }
 0x4d7   :  { %v1771_v57 = vpop.eup %1770 }
 0x4d9   :  { %v1773_v58 = vpop.eup %1772 }
 0x4da   :  { %v618_v59 = vpack.c.bf16 %v1773_v58, %v1771_v57 }
 0x4dc   :  { %1572 = vmatmul.mubr.bf16.vlgmr.msra.gmra.mrb[8].mxu1 %v618_v59 }
 0x4dd   :  { %1611 = vmatprep.mubr.msk.bf16.mxu1 %vm1842_vm0, %v1841_v0  ;;  %1596 = vmatpush3.bf16.msra.mxu1 %v1710_v21 }
 0x4de   :  { %1597 = vmatprep.subr.bf16.mxu1 %v1841_v0 }
 0x4e1   :  { %1598 = vmatpush3.bf16.msra.mxu1 %v1711_v22 }
 0x4e2   :  { %1599 = vmatprep.subr.bf16.mxu1 %v1841_v0 }
 0x4e5   :  { %1600 = vmatpush3.bf16.msra.mxu1 %v1712_v23 }
 0x4e6   :  { %1601 = vmatprep.subr.bf16.mxu1 %v1841_v0 }
 0x4e9   :  { %1602 = vmatpush3.bf16.msra.mxu1 %v1713_v24 }
 0x4ea   :  { %1603 = vmatprep.subr.bf16.mxu1 %v1841_v0 }
 0x4ed   :  { %1604 = vmatpush3.bf16.msra.mxu1 %v1714_v25 }
 0x4ee   :  { %1605 = vmatprep.subr.bf16.mxu1 %v1841_v0 }
 0x4f1   :  { %1606 = vmatpush3.bf16.msra.mxu1 %v1715_v26 }
 0x4f2   :  { %1607 = vmatprep.subr.bf16.mxu1 %v1841_v0 }
 0x4f5   :  { %1608 = vmatpush3.bf16.msra.mxu1 %v1716_v27 }
 0x4f6   :  { %1609 = vmatprep.subr.bf16.mxu1 %v1841_v0 }
 0x4f9   :  { %1610 = vmatpush3.bf16.msra.mxu1 %v1717_v28 }
 0x4fa   :  { %1635 = vmatprep.subr.bf16.mxu1 %v1841_v0 }
 0x5af   :  { %v726_v6 = vpop.f32.mrb[8].mxu1 }
 0x5b0   :  { %v727_v7 = vadd.f32 %v1329_v5, %v726_v6  ;;  %v1573_v8 = vpop.f32.mrb[9].mxu1  ;;  %v1726_v6 = vld [vmem:[#allocation2 + $0x200] sm:$0xff]  }
 0x5b1   :  { %v729_v9 = vpop.f32.mrb[10].mxu1  ;;  %v1728_v8 = vld [vmem:[#allocation2 + $0x210] sm:$0xff]  }
 0x5b2   :  { %v1338_v10 = vmul.f32 -1.442695, %v727_v7  ;;  %v730_v11 = vadd.f32 %v1329_v5, %v729_v9  ;;  %v1574_v12 = vpop.f32.mrb[11].mxu1  ;;  %v1727_v7 = vld [vmem:[#allocation2 + $0x208] sm:$0xff]   ;;  %v1729_v9 = vld [vmem:[#allocation2 + $0x218] sm:$0xff]  }
 0x5b3   :  { %v1732_v12 = vld [vmem:[#allocation2 + $0x230] sm:$0xff]  }
 0x5b4   :  { %1774 = vpow2.f32 %v1338_v10  ;;  %v1339_v13 = vmul.f32 -1.442695, %v730_v11  ;;  %v1730_v10 = vld [vmem:[#allocation2 + $0x220] sm:$0xff]   ;;  %v1731_v11 = vld [vmem:[#allocation2 + $0x228] sm:$0xff]  }
 0x5b6   :  { %1776 = vpow2.f32 %v1339_v13  ;;  %v1733_v13 = vld [vmem:[#allocation2 + $0x238] sm:$0xff]  }
 0x5be   :  { %v1775_v14 = vpop.eup %1774 }
 0x5bf   :  { %v739_v15 = vadd.f32 1.0, %v1775_v14  ;;  %v1365_v14 = vld [vmem:[%s2018_s3 + $0x8] ss:$0 sm:$0xff] }
 0x5c0   :  { %v1777_v16 = vpop.eup %1776 }
 0x5c1   :  { %v740_v17 = vadd.f32 1.0, %v1777_v16  ;;  %1778 = vrcp.f32 %v739_v15 }
 0x5c3   :  { %1780 = vrcp.f32 %v740_v17 }
 0x5cb   :  { %v1779_v18 = vpop.eup %1778 }
 0x5cd   :  { %v1781_v19 = vpop.eup %1780 }
 0x5ce   :  { %v745_v20 = vpack.c.bf16 %v1781_v19, %v1779_v18 }
 0x5d0   :  { %1592 = vmatmul.mubr.bf16.vlgmr.msra.gmra.mrb[12].mxu0 %v745_v20 }
 0x5d1   :  { %1631 = vmatprep.mubr.msk.bf16.mxu0 %vm1842_vm0, %v1841_v0  ;;  %1616 = vmatpush3.bf16.msra.mxu0 %v1718_v45 }
 0x5d2   :  { %1617 = vmatprep.subr.bf16.mxu0 %v1841_v0 }
 0x5d5   :  { %1618 = vmatpush3.bf16.msra.mxu0 %v1719_v46 }
 0x5d6   :  { %1619 = vmatprep.subr.bf16.mxu0 %v1841_v0 }
 0x5d9   :  { %1620 = vmatpush3.bf16.msra.mxu0 %v1720_v47 }
 0x5da   :  { %1621 = vmatprep.subr.bf16.mxu0 %v1841_v0 }
 0x5dd   :  { %1622 = vmatpush3.bf16.msra.mxu0 %v1721_v48 }
 0x5de   :  { %1623 = vmatprep.subr.bf16.mxu0 %v1841_v0 }
 0x5e1   :  { %1624 = vmatpush3.bf16.msra.mxu0 %v1722_v49 }
 0x5e2   :  { %1625 = vmatprep.subr.bf16.mxu0 %v1841_v0 }
 0x5e5   :  { %1626 = vmatpush3.bf16.msra.mxu0 %v1723_v50 }
 0x5e6   :  { %1627 = vmatprep.subr.bf16.mxu0 %v1841_v0 }
 0x5e9   :  { %1628 = vmatpush3.bf16.msra.mxu0 %v1724_v51 }
 0x5ea   :  { %1629 = vmatprep.subr.bf16.mxu0 %v1841_v0 }
 0x5ed   :  { %1630 = vmatpush3.bf16.msra.mxu0 %v1725_v52 }
 0x6a3   :  { %v853_v30 = vpop.f32.mrb[12].mxu0 }
 0x6a4   :  { %v854_v31 = vadd.f32 %v1341_v29, %v853_v30  ;;  %v1593_v32 = vpop.f32.mrb[13].mxu0 }
 0x6a5   :  { %v856_v33 = vpop.f32.mrb[14].mxu0 }
 0x6a6   :  { %v1350_v34 = vmul.f32 -1.442695, %v854_v31  ;;  %v857_v35 = vadd.f32 %v1341_v29, %v856_v33  ;;  %v1594_v36 = vpop.f32.mrb[15].mxu0  ;;  %v1241_v29 = vlaneseq  ;;  %v1377_v31 = vld [vmem:[%s2018_s3 + $0x9] ss:$0 sm:$0xff] }
 0x6a8   :  { %1782 = vpow2.f32 %v1350_v34  ;;  %v1351_v37 = vmul.f32 -1.442695, %v857_v35  ;;  %v1242_v30 = vand.u32 127, %v1241_v29 }
 0x6aa   :  { %1784 = vpow2.f32 %v1351_v37  ;;  %vm1243_vm2 = vcmp.lt.s32.totalorder %v1242_v30, 8 }
 0x6b2   :  { %v1783_v38 = vpop.eup %1782 }
 0x6b3   :  { %v866_v39 = vadd.f32 1.0, %v1783_v38 }
 0x6b4   :  { %v1785_v40 = vpop.eup %1784 }
 0x6b5   :  { %v867_v41 = vadd.f32 1.0, %v1785_v40  ;;  %1786 = vrcp.f32 %v866_v39 }
 0x6b7   :  { %1788 = vrcp.f32 %v867_v41 }
 0x6bf   :  { %v1787_v42 = vpop.eup %1786 }
 0x6c1   :  { %v1789_v43 = vpop.eup %1788 }
 0x6c2   :  { %v872_v44 = vpack.c.bf16 %v1789_v43, %v1787_v42 }
 0x6c4   :  { %1612 = vmatmul.mubr.bf16.vlgmr.msra.gmra.mrb[12].mxu1 %v872_v44 }
 0x6c5   :  { %1651 = vmatprep.mubr.msk.bf16.mxu1 %vm1842_vm0, %v1841_v0  ;;  %1636 = vmatpush3.bf16.msra.mxu1 %v1726_v6 }
 0x6c6   :  { %1637 = vmatprep.subr.bf16.mxu1 %v1841_v0 }
 0x6c9   :  { %1638 = vmatpush3.bf16.msra.mxu1 %v1727_v7 }
 0x6ca   :  { %1639 = vmatprep.subr.bf16.mxu1 %v1841_v0 }
 0x6cd   :  { %1640 = vmatpush3.bf16.msra.mxu1 %v1728_v8 }
 0x6ce   :  { %1641 = vmatprep.subr.bf16.mxu1 %v1841_v0 }
 0x6d1   :  { %1642 = vmatpush3.bf16.msra.mxu1 %v1729_v9 }
 0x6d2   :  { %1643 = vmatprep.subr.bf16.mxu1 %v1841_v0 }
 0x6d5   :  { %1644 = vmatpush3.bf16.msra.mxu1 %v1730_v10 }
 0x6d6   :  { %1645 = vmatprep.subr.bf16.mxu1 %v1841_v0 }
 0x6d9   :  { %1646 = vmatpush3.bf16.msra.mxu1 %v1731_v11 }
 0x6da   :  { %1647 = vmatprep.subr.bf16.mxu1 %v1841_v0 }
 0x6dd   :  { %1648 = vmatpush3.bf16.msra.mxu1 %v1732_v12 }
 0x6de   :  { %1649 = vmatprep.subr.bf16.mxu1 %v1841_v0 }
 0x6e1   :  { %1650 = vmatpush3.bf16.msra.mxu1 %v1733_v13 }
 0x797   :  { %v980_v54 = vpop.f32.mrb[12].mxu1 }
 0x798   :  { %v981_v55 = vadd.f32 %v1353_v53, %v980_v54  ;;  %v1613_v56 = vpop.f32.mrb[13].mxu1 }
 0x799   :  { %v983_v57 = vpop.f32.mrb[14].mxu1 }
 0x79a   :  { %v1362_v58 = vmul.f32 -1.442695, %v981_v55  ;;  %v984_v59 = vadd.f32 %v1353_v53, %v983_v57  ;;  %v1614_v60 = vpop.f32.mrb[15].mxu1 }
 0x79c   :  { %1790 = vpow2.f32 %v1362_v58  ;;  %v1363_v61 = vmul.f32 -1.442695, %v984_v59 }
 0x79e   :  { %1792 = vpow2.f32 %v1363_v61 }
 0x7a6   :  { %v1791_v62 = vpop.eup %1790 }
 0x7a7   :  { %v993_v63 = vadd.f32 1.0, %v1791_v62 }
 0x7a8   :  { %v1793_v1 = vpop.eup %1792 }
 0x7a9   :  { %v994_v2 = vadd.f32 1.0, %v1793_v1  ;;  %1794 = vrcp.f32 %v993_v63 }
 0x7ab   :  { %1796 = vrcp.f32 %v994_v2 }
 0x7b3   :  { %v1795_v3 = vpop.eup %1794 }
 0x7b5   :  { %v1797_v4 = vpop.eup %1796 }
 0x7b6   :  { %v999_v5 = vpack.c.bf16 %v1797_v4, %v1795_v3 }
 0x7b8   :  { %1632 = vmatmul.mubr.bf16.vlgmr.msra.gmra.mrb[16].mxu0 %v999_v5 }
 0x88b   :  { %v1107_v15 = vpop.f32.mrb[16].mxu0 }
 0x88c   :  { %v1108_v16 = vadd.f32 %v1365_v14, %v1107_v15  ;;  %v1633_v17 = vpop.f32.mrb[17].mxu0 }
 0x88d   :  { %v1110_v18 = vpop.f32.mrb[18].mxu0 }
 0x88e   :  { %v1374_v19 = vmul.f32 -1.442695, %v1108_v16  ;;  %v1111_v20 = vadd.f32 %v1365_v14, %v1110_v18  ;;  %v1634_v21 = vpop.f32.mrb[19].mxu0 }
 0x890   :  { %1798 = vpow2.f32 %v1374_v19  ;;  %v1375_v22 = vmul.f32 -1.442695, %v1111_v20 }
 0x892   :  { %1800 = vpow2.f32 %v1375_v22 }
 0x89a   :  { %v1799_v23 = vpop.eup %1798 }
 0x89b   :  { %v1120_v24 = vadd.f32 1.0, %v1799_v23 }
 0x89c   :  { %v1801_v25 = vpop.eup %1800 }
 0x89d   :  { %v1121_v26 = vadd.f32 1.0, %v1801_v25  ;;  %1802 = vrcp.f32 %v1120_v24 }
 0x89f   :  { %1804 = vrcp.f32 %v1121_v26 }
 0x8a7   :  { %v1803_v0 = vpop.eup %1802 }
 0x8a9   :  { %v1805_v27 = vpop.eup %1804 }
 0x8aa   :  { %v1126_v28 = vpack.c.bf16 %v1805_v27, %v1803_v0 }
 0x8ac   :  { %1652 = vmatmul.mubr.bf16.vlgmr.msra.gmra.mrb[16].mxu1 %v1126_v28 }
 0x97f   :  { %v1234_v32 = vpop.f32.mrb[16].mxu1 }
 0x980   :  { %v1235_v33 = vadd.f32 %v1377_v31, %v1234_v32  ;;  %v1653_v34 = vpop.f32.mrb[17].mxu1 }
 0x981   :  { %v1237_v35 = vpop.f32.mrb[18].mxu1 }
 0x982   :  { %v1238_v36 = vadd.f32 %v1377_v31, %v1237_v35  ;;  %v1654_v37 = vpop.f32.mrb[19].mxu1  ;;  %v1244_v38 = vsel %vm1243_vm2, %v1235_v33, -1e+30 }
 0x983   :  { %1246 = vmax.xlane.f32.xlu0 %v1244_v38 }
 0x984   :  { %v1245_v39 = vsel %vm1243_vm2, %v1238_v36, -1e+30 }
 0x987   :  { %1248 = vmax.xlane.f32.xlu0 %v1245_v39 }
 0xa10   :  { %v1247_v40 = vpop.xlane.xlu0 %1246 }
 0xa11   :  { %v1250_v41 = vsub.f32 %v1244_v38, %v1247_v40 }
 0xa13   :  { %v1252_v42 = vmul.f32 1.442695, %v1250_v41 }
 0xa14   :  { %v1249_v43 = vpop.xlane.xlu0 %1248 }
 0xa15   :  { %v1251_v44 = vsub.f32 %v1245_v39, %v1249_v43  ;;  %1806 = vpow2.f32 %v1252_v42 }
 0xa17   :  { %v1254_v45 = vmul.f32 1.442695, %v1251_v44 }
 0xa19   :  { %1808 = vpow2.f32 %v1254_v45 }
 0xa1f   :  { %v1807_v46 = vpop.eup %1806 }
 0xa20   :  { %1256 = vadd.xlane.f32.xlu1 %v1807_v46 }
 0xa23   :  { %v1809_v47 = vpop.eup %1808 }
 0xa24   :  { %1258 = vadd.xlane.f32.xlu1 %v1809_v47 }
 0xaad   :  { %v1257_v48 = vpop.xlane.xlu1 %1256 }
 0xaae   :  { %1810 = vlog2.f32 %v1257_v48 }
 0xab1   :  { %v1259_v49 = vpop.xlane.xlu1 %1258 }
 0xab2   :  { %1812 = vlog2.f32 %v1259_v49 }
 0xab8   :  { %v1811_v50 = vpop.eup %1810 }
 0xab9   :  { %v1261_v51 = vmul.f32 0.6931472, %v1811_v50 }
 0xabb   :  { %v1264_v52 = vsub.f32 %v1250_v41, %v1261_v51 }
 0xabc   :  { %v1813_v53 = vpop.eup %1812 }
 0xabd   :  { %1267 = vst.msk [vmem:[%s2019_s4] sm:$0xff] %vm1266_vm3, %v1264_v52  ;;  %v1263_v54 = vmul.f32 0.6931472, %v1813_v53 }
 0xabf   :  { %v1265_v55 = vsub.f32 %v1251_v44, %v1263_v54 }
 0xac1   :  { %1268 = vst.msk [vmem:[%s2019_s4 + $0x8] sm:$0xff] %vm1266_vm3, %v1265_v55 }
 0xac2   :  { %1273 = vsyncpa [#allocation3], 1 }

</bundles_post_ra>
